<compile_context>
chip_gen: v6e
topology: v6e:2x2x1
jax: 0.10.0
libtpu: 0.0.40
codegen_flags: <defaults>
</compile_context>

<pallas_src>
import jax
import jax.numpy as jnp
from jax.experimental import pallas as pl
from jax.experimental.pallas import tpu as pltpu


def _round_up(x, n):
    return (x + n - 1) // n * n


def _sublane_rows(dtype):
    """Rows per native sublane tile: 8 for f32, 16 for bf16, 32 for int8/fp8."""
    return 8 * max(1, 4 // jnp.dtype(dtype).itemsize)


def _vmem_budget_bytes():
    """Per-generation VMEM cap (v5e/v6e: 128 MiB, v7x: 64 MiB), ~15% headroom."""
    try:
        return int(0.85 * pltpu.get_tpu_info().vmem_capacity_bytes)
    except Exception:
        return 64 * 1024 * 1024  # conservative fallback (v7x-sized VMEM)


def _pick_tile_f(d_ffn, tile_f):
    """Largest multiple of 128 that divides d_ffn and is <= tile_f (lane-dense slabs)."""
    cand = (min(tile_f, d_ffn) // 128) * 128
    while cand >= 128:
        if d_ffn % cand == 0:
            return cand
        cand -= 128
    return d_ffn  # no lane-aligned divisor -> keep weights resident


def ffn_kernel(x_ref, w1_ref, b1_ref, w2_ref, b2_ref, o_ref, acc_ref):
    """One (tm, d_model) token tile x one (tf,) slice of the hidden dimension."""
    f = pl.program_id(1)

    @pl.when(f == 0)
    def _init():
        acc_ref[...] = jnp.zeros_like(acc_ref)

    # First linear on the MXU: (tm, d_model) @ (d_model, tf), f32 accumulate.
    h = jnp.dot(x_ref[...], w1_ref[...], preferred_element_type=jnp.float32)
    # Fused bias + ReLU on the VPU (free filler under MXU-bound bundles); cast
    # straight to the second-matmul dtype so only one (tm, tf) copy stays live.
    h = jnp.maximum(h + b1_ref[...].astype(jnp.float32), 0.0).astype(w2_ref.dtype)
    # Second linear chunk, accumulated in f32 across the d_ffn grid axis.
    acc_ref[...] += jnp.dot(h, w2_ref[...], preferred_element_type=jnp.float32)

    @pl.when(f == pl.num_programs(1) - 1)
    def _finalize():
        out = acc_ref[...] + b2_ref[...].astype(jnp.float32)
        # Dropout: eval-mode -> identity.
        # TODO(synk): training-mode dropout via pltpu.prng_seed + pltpu.prng_random_bits
        #             mask with 1/(1-p) scaling fused into this epilogue.
        o_ref[...] = out.astype(o_ref.dtype)


def ffn_forward(x, w1, b1, w2, b2, *, tile_m=256, tile_f=2048,
                force_ffn_split=False):
    """x: (batch, seq, d_model); w1: (d_model, d_ffn); b1: (d_ffn,);
       w2: (d_ffn, d_model); b2: (d_model,)."""
    batch, seq, d_model = x.shape
    d_ffn = w1.shape[1]
    m = batch * seq

    x_bpe = jnp.dtype(x.dtype).itemsize
    w_bpe = jnp.dtype(w1.dtype).itemsize
    b_bpe = jnp.dtype(b1.dtype).itemsize

    # Token-tile rows: dtype-native sublane multiple (avoids masked sublanes on bf16).
    sub = _sublane_rows(x.dtype)
    tm = max(sub, _round_up(min(tile_m, m), sub))
    # Partial last M block is masked by Pallas -> no jnp.pad / out[:m] HBM round trip.
    grid_m = pl.cdiv(m, tm)

    budget = _vmem_budget_bytes()

    def footprint(tf, n_wbuf):
        return (2 * tm * d_model * x_bpe                   # x tiles (double-buffered)
                + 2 * tm * d_model * x_bpe                 # out tiles (double-buffered)
                + n_wbuf * 2 * d_model * tf * w_bpe        # w1 + w2 slabs
                + n_wbuf * tf * b_bpe + d_model * b_bpe    # biases
                + tm * d_model * 4                         # f32 accumulator scratch
                + tm * tf * (4 + w_bpe))                   # (tm, tf) intermediate

    # Keep full weights VMEM-resident (single-buffered) when they fit the budget;
    # otherwise stream weight slabs over an inner "arbitrary" d_ffn axis.
    resident = (not force_ffn_split) and footprint(d_ffn, 1) <= budget
    tf = d_ffn if resident else _pick_tile_f(d_ffn, tile_f)
    resident = resident or (tf == d_ffn)
    grid_f = d_ffn // tf
    n_wbuf = 1 if resident else 2
    vmem_limit = int(min(budget, max(32 * 1024 * 1024, 2 * footprint(tf, n_wbuf))))

    x2d = x.reshape(m, d_model)
    b1_2d = b1.reshape(1, d_ffn)
    b2_2d = b2.reshape(1, d_model)

    def spec(shape, index_map, single_buffer=False):
        # Constant-index operands get a single VMEM buffer (no wasted double buffer).
        if single_buffer:
            return pl.BlockSpec(shape, index_map, pipeline_mode=pl.Buffered(1))
        return pl.BlockSpec(shape, index_map)

    in_specs = [
        spec((tm, d_model), lambda i, f: (i, 0)),                           # x tile
        spec((d_model, tf), lambda i, f: (0, f), single_buffer=resident),   # w1 slab
        spec((1, tf),       lambda i, f: (0, f), single_buffer=resident),   # b1 slab
        spec((tf, d_model), lambda i, f: (f, 0), single_buffer=resident),   # w2 slab
        spec((1, d_model),  lambda i, f: (0, 0), single_buffer=True),       # b2 (const)
    ]
    out_spec = pl.BlockSpec((tm, d_model), lambda i, f: (i, 0))

    flops = 4 * m * d_model * d_ffn                       # two matmuls
    weight_passes = 1 if resident else grid_m             # streamed slabs re-read per M tile
    bytes_accessed = int(m * d_model * 2 * x_bpe          # read x, write out
                         + weight_passes * 2 * d_model * d_ffn * w_bpe
                         + d_ffn * b_bpe + d_model * b_bpe)

    out2d = pl.pallas_call(
        ffn_kernel,
        out_shape=jax.ShapeDtypeStruct((m, d_model), x.dtype),
        grid_spec=pltpu.PrefetchScalarGridSpec(
            num_scalar_prefetch=0,
            grid=(grid_m, grid_f),
            in_specs=in_specs,
            out_specs=out_spec,
            scratch_shapes=[pltpu.VMEM((tm, d_model), jnp.float32)]),
        compiler_params=pltpu.CompilerParams(
            dimension_semantics=("parallel", "arbitrary"),
            vmem_limit_bytes=vmem_limit),
        cost_estimate=pl.CostEstimate(
            flops=flops, transcendentals=0, bytes_accessed=bytes_accessed),
    )(x2d, w1, b1_2d, w2, b2_2d)

    return out2d.reshape(batch, seq, d_model)


def init_ffn_params(key, d_model, d_ffn, dtype=jnp.float32):
    """Deterministic nn.Linear-style init (uniform in +-1/sqrt(fan_in))."""
    k1, k2, k3, k4 = jax.random.split(key, 4)
    bound1 = 1.0 / (d_model ** 0.5)
    bound2 = 1.0 / (d_ffn ** 0.5)
    # Stored as [in, out] (transposed from PyTorch's [out, in]).
    w1 = jax.random.uniform(k1, (d_model, d_ffn), dtype, -bound1, bound1)
    b1 = jax.random.uniform(k2, (d_ffn,), dtype, -bound1, bound1)
    w2 = jax.random.uniform(k3, (d_ffn, d_model), dtype, -bound2, bound2)
    b2 = jax.random.uniform(k4, (d_model,), dtype, -bound2, bound2)
    return w1, b1, w2, b2


if __name__ == "__main__":
    batch, seq, d_model, d_ffn = 2, 8, 32, 64

    key = jax.random.PRNGKey(0)
    kx, kp, kp2 = jax.random.split(key, 3)
    x = jax.random.normal(kx, (batch, seq, d_model), jnp.float32)
    w1, b1, w2, b2 = init_ffn_params(kp, d_model, d_ffn)

    # Reference in plain JAX (eval-mode dropout = identity).
    ref = jnp.maximum(x @ w1 + b1, 0.0) @ w2 + b2

    # 1) Default path (weights VMEM-resident, single M tile at this toy size).
    out = jax.block_until_ready(ffn_forward(x, w1, b1, w2, b2))
    assert out.shape == (batch, seq, d_model)
    assert jnp.allclose(out, ref, atol=1e-4, rtol=1e-4)

    # 2) Multi-step M grid (pipelined x/out tiles + "parallel" M axis).
    out_tiled = jax.block_until_ready(ffn_forward(x, w1, b1, w2, b2, tile_m=8))
    assert jnp.allclose(out_tiled, ref, atol=1e-4, rtol=1e-4)

    # 3) Ragged M (batch*seq not a multiple of tile_m): partial last block is
    #    masked by Pallas directly -- no HBM pad/slice round trip.
    x_odd = jax.random.normal(kx, (3, 5, d_model), jnp.float32)
    ref_odd = jnp.maximum(x_odd @ w1 + b1, 0.0) @ w2 + b2
    out_odd = jax.block_until_ready(ffn_forward(x_odd, w1, b1, w2, b2, tile_m=8))
    assert jnp.allclose(out_odd, ref_odd, atol=1e-4, rtol=1e-4)

    # 4) bf16 operands (bf16 MXU fast path, 16-row sublane-aligned M tiles).
    xb = x.astype(jnp.bfloat16)
    w1b, w2b = w1.astype(jnp.bfloat16), w2.astype(jnp.bfloat16)
    out_bf16 = jax.block_until_ready(ffn_forward(xb, w1b, b1, w2b, b2))
    assert jnp.allclose(out_bf16.astype(jnp.float32), ref, atol=5e-2, rtol=5e-2)

    # 5) d_ffn-split path (streamed weight slabs + f32 accumulator over the
    #    inner "arbitrary" axis), forced at toy size so the path is exercised.
    d_ffn_big = 256
    w1s, b1s, w2s, b2s = init_ffn_params(kp2, d_model, d_ffn_big)
    ref_split = jnp.maximum(x @ w1s + b1s, 0.0) @ w2s + b2s
    out_split = jax.block_until_ready(
        ffn_forward(x, w1s, b1s, w2s, b2s, tile_m=8, tile_f=128,
                    force_ffn_split=True))
    assert jnp.allclose(out_split, ref_split, atol=1e-4, rtol=1e-4)

    print("KERNEL_OK")
</pallas_src>

<mosaic_0001>
module attributes {stable_mosaic.version = 11 : i64} {
  func.func @ffn_kernel(%arg0: i32, %arg1: i32, %arg2: memref<16x32xf32, #tpu.memory_space<vmem>>, %arg3: memref<32x64xf32, #tpu.memory_space<vmem>>, %arg4: memref<1x64xf32, #tpu.memory_space<vmem>>, %arg5: memref<64x32xf32, #tpu.memory_space<vmem>>, %arg6: memref<1x32xf32, #tpu.memory_space<vmem>>, %arg7: memref<16x32xf32, #tpu.memory_space<vmem>>, %arg8: memref<16x32xf32, #tpu.memory_space<vmem>>) attributes {dimension_semantics = [#tpu.dimension_semantics<parallel>, #tpu.dimension_semantics<arbitrary>], iteration_bounds = array<i64: 1, 1>, scalar_prefetch = 0 : i64, scratch_operands = 1 : i64, tpu.core_type = #tpu.core_type<tc>, window_params = [{transform_indices = @transform_0, window_bounds = array<i64: 16, 32>}, {pipeline_mode = #tpu.pipeline_mode<synchronous>, transform_indices = @transform_1, window_bounds = array<i64: 32, 64>}, {pipeline_mode = #tpu.pipeline_mode<synchronous>, transform_indices = @transform_2, window_bounds = array<i64: 1, 64>}, {pipeline_mode = #tpu.pipeline_mode<synchronous>, transform_indices = @transform_3, window_bounds = array<i64: 64, 32>}, {pipeline_mode = #tpu.pipeline_mode<synchronous>, transform_indices = @transform_4, window_bounds = array<i64: 1, 32>}, {transform_indices = @transform_5, window_bounds = array<i64: 16, 32>}]} {
    %c0_i32 = arith.constant 0 : i32
    %0 = arith.cmpi eq, %arg1, %c0_i32 : i32
    %1 = arith.extui %0 : i1 to i32
    %c0_i32_0 = arith.constant 0 : i32
    %2 = arith.cmpi ne, %1, %c0_i32_0 : i32
    scf.if %2 {
      %cst_16 = arith.constant 0.000000e+00 : f32
      %19 = vector.broadcast %cst_16 : f32 to vector<16x32xf32>
      %c0_17 = arith.constant 0 : index
      %c0_18 = arith.constant 0 : index
      %20 = vector.load %arg8[%c0_17, %c0_18] : memref<16x32xf32, #tpu.memory_space<vmem>>, vector<16x32xf32>
      tpu.vector_store %arg8[%c0_17, %c0_18], %19 {strides = array<i32>} : memref<16x32xf32, #tpu.memory_space<vmem>>, vector<16x32xf32>,
    } else {
    }
    %c0 = arith.constant 0 : index
    %c0_1 = arith.constant 0 : index
    %3 = vector.load %arg2[%c0, %c0_1] : memref<16x32xf32, #tpu.memory_space<vmem>>, vector<16x32xf32>
    %c0_2 = arith.constant 0 : index
    %c0_3 = arith.constant 0 : index
    %4 = vector.load %arg3[%c0_2, %c0_3] : memref<32x64xf32, #tpu.memory_space<vmem>>, vector<32x64xf32>
    %cst = arith.constant dense<0.000000e+00> : vector<16x64xf32>
    %5 = tpu.matmul %3, %4, %cst {dimension_numbers = #tpu.dot_dimension_numbers<[1], [0], [0], [1], [0, 0, 1, 1], [], []>} : vector<16x32xf32>, vector<32x64xf32>, vector<16x64xf32> -> vector<16x64xf32>
    %c0_4 = arith.constant 0 : index
    %c0_5 = arith.constant 0 : index
    %6 = vector.load %arg4[%c0_4, %c0_5] : memref<1x64xf32, #tpu.memory_space<vmem>>, vector<1x64xf32>
    %7 = vector.broadcast %6 : vector<1x64xf32> to vector<16x64xf32>
    %8 = arith.addf %5, %7 : vector<16x64xf32>
    %cst_6 = arith.constant 0.000000e+00 : f32
    %9 = vector.broadcast %cst_6 : f32 to vector<16x64xf32>
    %10 = arith.maximumf %8, %9 : vector<16x64xf32>
    %c0_7 = arith.constant 0 : index
    %c0_8 = arith.constant 0 : index
    %11 = vector.load %arg8[%c0_7, %c0_8] : memref<16x32xf32, #tpu.memory_space<vmem>>, vector<16x32xf32>
    %c0_9 = arith.constant 0 : index
    %c0_10 = arith.constant 0 : index
    %12 = vector.load %arg5[%c0_9, %c0_10] : memref<64x32xf32, #tpu.memory_space<vmem>>, vector<64x32xf32>
    %cst_11 = arith.constant dense<0.000000e+00> : vector<16x32xf32>
    %13 = tpu.matmul %10, %12, %cst_11 {dimension_numbers = #tpu.dot_dimension_numbers<[1], [0], [0], [1], [0, 0, 1, 1], [], []>} : vector<16x64xf32>, vector<64x32xf32>, vector<16x32xf32> -> vector<16x32xf32>
    %14 = arith.addf %11, %13 : vector<16x32xf32>
    %c0_12 = arith.constant 0 : index
    %c0_13 = arith.constant 0 : index
    %15 = vector.load %arg8[%c0_12, %c0_13] : memref<16x32xf32, #tpu.memory_space<vmem>>, vector<16x32xf32>
    tpu.vector_store %arg8[%c0_12, %c0_13], %14 {strides = array<i32>} : memref<16x32xf32, #tpu.memory_space<vmem>>, vector<16x32xf32>,
    %c0_i32_14 = arith.constant 0 : i32
    %16 = arith.cmpi eq, %arg1, %c0_i32_14 : i32
    %17 = arith.extui %16 : i1 to i32
    %c0_i32_15 = arith.constant 0 : i32
    %18 = arith.cmpi ne, %17, %c0_i32_15 : i32
    scf.if %18 {
      %c0_16 = arith.constant 0 : index
      %c0_17 = arith.constant 0 : index
      %19 = vector.load %arg8[%c0_16, %c0_17] : memref<16x32xf32, #tpu.memory_space<vmem>>, vector<16x32xf32>
      %c0_18 = arith.constant 0 : index
      %c0_19 = arith.constant 0 : index
      %20 = vector.load %arg6[%c0_18, %c0_19] : memref<1x32xf32, #tpu.memory_space<vmem>>, vector<1x32xf32>
      %21 = vector.broadcast %20 : vector<1x32xf32> to vector<16x32xf32>
      %22 = arith.addf %19, %21 : vector<16x32xf32>
      %c0_20 = arith.constant 0 : index
      %c0_21 = arith.constant 0 : index
      %23 = vector.load %arg7[%c0_20, %c0_21] : memref<16x32xf32, #tpu.memory_space<vmem>>, vector<16x32xf32>
      tpu.vector_store %arg7[%c0_20, %c0_21], %22 {strides = array<i32>} : memref<16x32xf32, #tpu.memory_space<vmem>>, vector<16x32xf32>,
    } else {
    }
    return
  }
  func.func @transform_0(%arg0: i32, %arg1: i32) -> (i32, i32) {
    %c0_i32 = arith.constant 0 : i32
    %c0_i32_0 = arith.constant 0 : i32
    return %arg0, %c0_i32 : i32, i32
  }
  func.func @transform_1(%arg0: i32, %arg1: i32) -> (i32, i32) {
    %c0_i32 = arith.constant 0 : i32
    %c0_i32_0 = arith.constant 0 : i32
    return %c0_i32, %arg1 : i32, i32
  }
  func.func @transform_2(%arg0: i32, %arg1: i32) -> (i32, i32) {
    %c0_i32 = arith.constant 0 : i32
    %c0_i32_0 = arith.constant 0 : i32
    return %c0_i32, %arg1 : i32, i32
  }
  func.func @transform_3(%arg0: i32, %arg1: i32) -> (i32, i32) {
    %c0_i32 = arith.constant 0 : i32
    %c0_i32_0 = arith.constant 0 : i32
    return %arg1, %c0_i32 : i32, i32
  }
  func.func @transform_4(%arg0: i32, %arg1: i32) -> (i32, i32) {
    %c0_i32 = arith.constant 0 : i32
    %c0_i32_0 = arith.constant 0 : i32
    %c0_i32_1 = arith.constant 0 : i32
    return %c0_i32, %c0_i32_0 : i32, i32
  }
  func.func @transform_5(%arg0: i32, %arg1: i32) -> (i32, i32) {
    %c0_i32 = arith.constant 0 : i32
    %c0_i32_0 = arith.constant 0 : i32
    return %arg0, %c0_i32 : i32, i32
  }
}

</mosaic_0001>

<bundles_post_ra>
// kernel: tpu_custom_call.1
= control target key start
LH: loop header
LB: loop body
LE: loop exit
PB: predicated region body
PF: predicated region fallthrough
CT: control target
= control target key end

     0   :  { %vm25_vm0 = vcmask 261120   ;;  %s424_s0 = inlined_call_operand.vmem [shape: f32[16,32], index: 0, kind: input, shape index: {}]   ;;  %s425_s1 = inlined_call_operand.vmem [shape: f32[32,64], index: 1, kind: input, shape index: {}]   ;;  %s426_s2 = inlined_call_operand.vmem [shape: f32[1,64], index: 2, kind: input, shape index: {}]   ;;  %s427_s3 = inlined_call_operand.vmem [shape: f32[64,32], index: 3, kind: input, shape index: {}]   ;;  %s428_s4 = inlined_call_operand.vmem [shape: f32[1,32], index: 4, kind: input, shape index: {}]   ;;  %s429_s5 = inlined_call_operand.hbm [shape: f32[16,32], index: 5, kind: output, shape index: {}]  }
   0x1   :  { %v33_v0 = vld [vmem:[%s425_s1 + $0x18] sm:$0xff]  ;;  %v32_v1 = vld [vmem:[%s425_s1 + $0x10] sm:$0xff]  ;;  %v28_v2 = vld [vmem:[%s424_s0] sm:$0xff] }
   0x2   :  { %275 = vmatprep.subr.mxu0 %v33_v0  ;;  %v31_v3 = vld [vmem:[%s425_s1 + $0x8] sm:$0xff]  ;;  %283 = vmatprep.mubr.msk.f32.mxu0 %vm25_vm0, %v28_v2  ;;  %v134_v4 = vld [vmem:[%s427_s3 + $0x38] sm:$0xff]  ;;  %v133_v5 = vld [vmem:[%s427_s3 + $0x30] sm:$0xff] }
   0x3   :  { %276 = vmatpush3.msra.mxu0 %v33_v0  ;;  %286 = vmatprep.subr.mxu1 %v134_v4 }
   0x4   :  { %277 = vmatprep.subr.mxu0 %v32_v1 }
   0x5   :  { %10 = vsyncpa [#allocation4], 0  ;;  %278 = vmatpush3.msra.mxu0 %v32_v1  ;;  %v30_v6 = vld [vmem:[%s425_s1] sm:$0xff]  ;;  %287 = vmatpush3.msra.mxu1 %v134_v4  ;;  %v132_v7 = vld [vmem:[%s427_s3 + $0x28] sm:$0xff]  ;;  %v331_v14 = vmov 0.0   ;;  %vm135_vm1 = vcmask 523264  }
   0x6   :  { %279 = vmatprep.subr.mxu0 %v31_v3  ;;  %288 = vmatprep.subr.mxu1 %v133_v5  ;;  %v29_v8 = vld [vmem:[%s424_s0 + $0x8] sm:$0xff]  ;;  %v131_v9 = vld [vmem:[%s427_s3 + $0x20] sm:$0xff]  ;;  %v130_v10 = vld [vmem:[%s427_s3 + $0x18] sm:$0xff]  ;;  %27 = vst.msk [vmem:[#allocation2 + $0x8] sm:$0xff] %vm25_vm0, %v331_v14  ;;  %s332_s21 = smov [#allocation3]  }
   0x7   :  { %280 = vmatpush3.msra.mxu0 %v31_v3  ;;  %289 = vmatpush3.msra.mxu1 %v133_v5  ;;  %v129_v11 = vld [vmem:[%s427_s3 + $0x10] sm:$0xff]  ;;  %v128_v12 = vld [vmem:[%s427_s3 + $0x8] sm:$0xff]  ;;  %v127_v13 = vld [vmem:[%s427_s3] sm:$0xff]  ;;  %26 = vst.msk [vmem:[#allocation2] sm:$0xff] %vm25_vm0, %v331_v14  ;;  %s242_s22 = sshll.u32 %s332_s21, 4  ;;  %s243_s22 = int_to_ptr.vmem [resolvable:$true] %s242_s22 }
   0x8   :  { %281 = vmatprep.subr.mxu0 %v30_v6  ;;  %290 = vmatprep.subr.mxu1 %v132_v7  ;;  %v253_v15 = vld [vmem:[%s426_s2] ss:$0 sm:$0xff]  ;;  %s309_s23 = scalar_lea.vmem %s243_s22, 256  ;;  %p314_p1 = scmp.lt.s32.totalorder %s243_s22, %s243_s22 }
   0x9   :  { %282 = vmatpush3.msra.mxu0 %v30_v6  ;;  %291 = vmatpush3.msra.mxu1 %v132_v7  ;;  %v258_v28 = vld [vmem:[%s428_s4] ss:$0 sm:$0xff]  ;;  %p310_p0 = scmp.ne.s32.totalorder %s243_s22, %s309_s23  ;;  %p315_p2 = scmp.lt.s32.totalorder %s309_s23, %s309_s23 }
   0xa   :  { %284 = vmatmul.mubr.msk.f32.vlgmr.msra.gmra.mxu0 %vm25_vm0, %v29_v8  ;;  %292 = vmatprep.subr.mxu1 %v131_v9 }
   0xb   :  { %293 = vmatpush3.msra.mxu1 %v131_v9  ;;  %p316_p3 = por %p315_p2, %p314_p1 }
   0xc   :  { %294 = vmatprep.subr.mxu1 %v130_v10 }
   0xd   :  { %295 = vmatpush3.msra.mxu1 %v130_v10  ;;  %v126_v22 = vld [vmem:[#allocation2 + $0x8] sm:$0xff]  ;;  %p317_p4 = pnand %p316_p3, %p310_p0 }
   0xe   :  { %296 = vmatprep.subr.mxu1 %v129_v11  ;;  %v125_v24 = vld [vmem:[#allocation2] sm:$0xff] }
   0xf   :  { %297 = vmatpush3.msra.mxu1 %v129_v11 }
  0x10   :  { %298 = vmatprep.subr.mxu1 %v128_v12 }
  0x11   :  { %299 = vmatpush3.msra.mxu1 %v128_v12 }
  0x12   :  { %300 = vmatprep.subr.mxu1 %v127_v13 }
  0x13   :  { %301 = vmatpush3.msra.mxu1 %v127_v13 }
  0xca   :  { %v285_v16 = vpop.f32.mrf.mxu0 }
  0xcb   :  { %v120_v17 = vadd.f32 %v285_v16, %v253_v15 }
  0xcc   :  { %v114_v18 = vpop.f32.mrf.mxu0 }
  0xcd   :  { %v115_v19 = vadd.f32 %v253_v15, %v114_v18  ;;  %v124_v21 = vmax.f32 %v120_v17, 0.0 }
  0xcf   :  { %v123_v20 = vmax.f32 %v115_v19, 0.0 }
  0xd1   :  { %302 = vmatprep.mubr.msk.f32.mxu1 %vm135_vm1, %v123_v20 }
  0xd2   :  { %303 = vmatmul.mubr.msk.f32.vlgmr.msra.gmra.mxu1 %vm135_vm1, %v124_v21 }
 0x192   :  { %v304_v23 = vpop.f32.mrf.mxu1 }
 0x193   :  { %v218_v25 = vadd.f32 %v304_v23, %v126_v22 }
 0x194   :  { %v208_v26 = vpop.f32.mrf.mxu1 }
 0x195   :  { %220 = vst.msk [vmem:[#allocation2 + $0x8] sm:$0xff] %vm25_vm0, %v218_v25  ;;  %v217_v27 = vadd.f32 %v208_v26, %v125_v24 }
 0x197   :  { %219 = vst.msk [vmem:[#allocation2] sm:$0xff] %vm25_vm0, %v217_v27 }
 0x19c   :  { %v225_v29 = vld [vmem:[#allocation2 + $0x8] sm:$0xff] }
 0x19d   :  { %v234_v30 = vadd.f32 %v258_v28, %v225_v29 }
 0x19e   :  { %v224_v31 = vld [vmem:[#allocation2] sm:$0xff] }
 0x19f   :  { %v233_v32 = vadd.f32 %v258_v28, %v224_v31  ;;  %236 = vst.msk [vmem:[#allocation3 + $0x8] sm:$0xff] %vm25_vm0, %v234_v30 }
 0x1a1   :  { %235 = vst.msk [vmem:[#allocation3] sm:$0xff] %vm25_vm0, %v233_v32 }
 0x1a2   :  { %320 = shalt.err (!%p317_p4)
}
 0x1a3   :  { %s333_s24 = smov 128   ;;  %s334_s4 = smov 8  }
 0x1a4   :  { %248 = dma.vmem_to_hbm [thread:$0]  %s243_s22, 256, %s429_s5, [#allocation4], %s333_s24, %s333_s24, %s334_s4  }
 0x1a5   :  { %329 = dma.done.wait [#allocation4], 256  }
 0x1a6   :  { %330 = vsyncadd [#allocation4], 4294967040 }
 0x1a7   :  { %252 = vsyncpa [#allocation4], 1 }

</bundles_post_ra>
